<compile_context>
chip_gen: v7x
topology: tpu7x:2x2x1
jax: 0.10.0
libtpu: 0.0.40
codegen_flags: <defaults>
</compile_context>

<pallas_src>
import math

import jax
import jax.numpy as jnp
from jax.experimental import pallas as pl
from jax.experimental.pallas import tpu as pltpu


_SQRT_2_OVER_PI = math.sqrt(2.0 / math.pi)
_GELU_COEF = 0.044715


def _gelu_kernel(x_ref, o_ref):
    # Elementwise tanh-approx GELU. Upcast to f32 for accuracy (mandatory on
    # v5e: no bf16 VPU/EUP), cast back to the I/O dtype. tanh -> EUP slot,
    # cubic -> VPU slot; the kernel is HBM-bandwidth bound, so no compute tuning.
    xf = x_ref[...].astype(jnp.float32)
    inner = _SQRT_2_OVER_PI * (xf + _GELU_COEF * xf * xf * xf)
    o_ref[...] = (0.5 * xf * (1.0 + jnp.tanh(inner))).astype(o_ref.dtype)


def _choose_lane_width(total: int) -> tuple[int, int]:
    """Pick a lane-dense width W (multiple of 128). Returns (W, tail_pad)."""
    for cand in (4096, 2048, 1024, 512, 256, 128):
        if total % cand == 0:
            return cand, 0          # no padding / no extra HBM pass
    w = 1024                        # rare fallback: pad only a (<W)-element tail
    return w, (-total) % w


def _choose_row_tile(rows: int, lane_width: int, itemsize: int) -> int:
    """~2 MiB per pipeline buffer; multiple of 8 sublanes; >=2 grid steps when possible."""
    if rows < 8:
        return rows                 # block second-to-last dim == full array dim
    target_bytes = 2 << 20          # 2 MiB/buf -> <=8 MiB double-buffered in+out
    rt = max(8, (target_bytes // (lane_width * itemsize)) // 8 * 8)
    if rt >= rows:
        if rows >= 16:
            # Split into >=2 grid steps so both v7x TensorCores are used.
            rt = max(8, (rows // 2) // 8 * 8)
        else:
            rt = rows
    return min(rt, rows)


def gelu_pallas(x: jax.Array) -> jax.Array:
    """Applies tanh-approx GELU elementwise via a Pallas TPU kernel."""
    orig_shape = x.shape
    total = math.prod(orig_shape)
    if total == 0:
        return x

    lane_width, tail_pad = _choose_lane_width(total)
    flat = x.reshape(-1)
    if tail_pad:
        # Only a small tail is padded (gelu(0) = 0, so padding is benign).
        flat = jnp.pad(flat, (0, tail_pad))
    rows = (total + tail_pad) // lane_width
    x2 = flat.reshape(rows, lane_width)

    row_tile = _choose_row_tile(rows, lane_width, jnp.dtype(x.dtype).itemsize)
    # Partial final block is safe: elementwise op, Pallas masks the writeback.
    grid = (pl.cdiv(rows, row_tile),)

    out = pl.pallas_call(
        _gelu_kernel,
        out_shape=jax.ShapeDtypeStruct((rows, lane_width), x.dtype),
        grid_spec=pltpu.PrefetchScalarGridSpec(
            num_scalar_prefetch=0,
            grid=grid,
            in_specs=[pl.BlockSpec((row_tile, lane_width), lambda i: (i, 0))],
            out_specs=pl.BlockSpec((row_tile, lane_width), lambda i: (i, 0)),
        ),
        compiler_params=pltpu.CompilerParams(
            dimension_semantics=("parallel",),
        ),
    )(x2)

    if tail_pad:
        out = out.reshape(-1)[:total]
    return out.reshape(orig_shape)


def gelu_ref(x: jax.Array) -> jax.Array:
    xf = x.astype(jnp.float32)
    return (0.5 * xf * (1.0 + jnp.tanh(_SQRT_2_OVER_PI * (xf + _GELU_COEF * xf ** 3)))).astype(x.dtype)


if __name__ == "__main__":
    key = jax.random.PRNGKey(0)

    # Small NCHW-like input, consistent with a generic elementwise activation.
    x = jax.random.normal(key, (2, 4, 16, 16), dtype=jnp.float32)
    y = gelu_pallas(x)
    jax.block_until_ready(y)
    assert y.shape == x.shape and y.dtype == x.dtype
    assert jnp.allclose(y, gelu_ref(x), atol=1e-5, rtol=1e-5), "mismatch vs reference GELU"

    # Exercise the non-128-multiple (tail-pad) path as well.
    x2 = jax.random.normal(jax.random.PRNGKey(1), (3, 5, 7), dtype=jnp.float32)
    y2 = gelu_pallas(x2)
    jax.block_until_ready(y2)
    assert y2.shape == x2.shape and y2.dtype == x2.dtype
    assert jnp.allclose(y2, gelu_ref(x2), atol=1e-5, rtol=1e-5), "mismatch vs reference GELU (padded path)"

    print("KERNEL_OK")
</pallas_src>

<mosaic_0001>
module attributes {stable_mosaic.version = 11 : i64} {
  func.func @_gelu_kernel(%arg0: i32, %arg1: memref<1x2048xf32, #tpu.memory_space<vmem>>, %arg2: memref<1x2048xf32, #tpu.memory_space<vmem>>) attributes {dimension_semantics = [#tpu.dimension_semantics<parallel>], iteration_bounds = array<i64: 1>, scalar_prefetch = 0 : i64, scratch_operands = 0 : i64, tpu.core_type = #tpu.core_type<tc>, window_params = [{transform_indices = @transform_0, window_bounds = array<i64: 1, 2048>}, {transform_indices = @transform_1, window_bounds = array<i64: 1, 2048>}]} {
    %c0 = arith.constant 0 : index
    %c0_0 = arith.constant 0 : index
    %0 = vector.load %arg1[%c0, %c0_0] : memref<1x2048xf32, #tpu.memory_space<vmem>>, vector<1x2048xf32>
    %cst = arith.constant 4.471500e-02 : f32
    %1 = vector.broadcast %cst : f32 to vector<1x2048xf32>
    %2 = arith.mulf %1, %0 : vector<1x2048xf32>
    %3 = arith.mulf %2, %0 : vector<1x2048xf32>
    %4 = arith.mulf %3, %0 : vector<1x2048xf32>
    %5 = arith.addf %0, %4 : vector<1x2048xf32>
    %cst_1 = arith.constant 0.797884583 : f32
    %6 = vector.broadcast %cst_1 : f32 to vector<1x2048xf32>
    %7 = arith.mulf %6, %5 : vector<1x2048xf32>
    %cst_2 = arith.constant 5.000000e-01 : f32
    %8 = vector.broadcast %cst_2 : f32 to vector<1x2048xf32>
    %9 = arith.mulf %8, %0 : vector<1x2048xf32>
    %10 = math.tanh %7 : vector<1x2048xf32>
    %cst_3 = arith.constant 1.000000e+00 : f32
    %11 = vector.broadcast %cst_3 : f32 to vector<1x2048xf32>
    %12 = arith.addf %11, %10 : vector<1x2048xf32>
    %13 = arith.mulf %9, %12 : vector<1x2048xf32>
    %c0_4 = arith.constant 0 : index
    %c0_5 = arith.constant 0 : index
    %14 = vector.load %arg2[%c0_4, %c0_5] : memref<1x2048xf32, #tpu.memory_space<vmem>>, vector<1x2048xf32>
    tpu.vector_store %arg2[%c0_4, %c0_5], %13 {strides = array<i32>} : memref<1x2048xf32, #tpu.memory_space<vmem>>, vector<1x2048xf32>,
    return
  }
  func.func @transform_0(%arg0: i32) -> (i32, i32) {
    %c0_i32 = arith.constant 0 : i32
    %c0_i32_0 = arith.constant 0 : i32
    return %arg0, %c0_i32 : i32, i32
  }
  func.func @transform_1(%arg0: i32) -> (i32, i32) {
    %c0_i32 = arith.constant 0 : i32
    %c0_i32_0 = arith.constant 0 : i32
    return %arg0, %c0_i32 : i32, i32
  }
}

</mosaic_0001>

<bundles_post_ra>
// kernel: tpu_custom_call.1
= control target key start
LH: loop header
LB: loop body
LE: loop exit
PB: predicated region body
PF: predicated region fallthrough
CT: control target
= control target key end

     0   :  { %6 = vsyncpa [#allocation3], 0  ;;  %s148_s0 = inlined_call_operand.hbm [shape: f32[1,2048], index: 0, kind: input, shape index: {}]   ;;  %s149_s1 = inlined_call_operand.hbm [shape: f32[1,2048], index: 1, kind: output, shape index: {}]  }
   0x1   :  { %7 = vsyncpa [#allocation4], 0  ;;  %s112_s6 = smov [#allocation2]   ;;  %s64_s10 = scalar_lea.hbm %s148_s0, 256 }
   0x2   :  { %s14_s7 = sshll.u32 %s112_s6, 4  ;;  %p65_p0 = scmp.ne.s32.totalorder %s148_s0, %s64_s10  ;;  %s15_s7 = int_to_ptr.vmem [resolvable:$true] %s14_s7 }
   0x3   :  { %p68_p1 = scmp.lt.u32.totalorder %s64_s10, %s148_s0 }
   0x5   :  { %p70_p2 = pnand %p68_p1, %p65_p0 }
   0x7   :  { %73 = shalt.err (!%p70_p2)
}
   0x8   :  { %s74_s15 = scalar_lea.vmem %s15_s7, 256  ;;  %p79_p4 = scmp.lt.s32.totalorder %s15_s7, %s15_s7 }
   0x9   :  { %p75_p3 = scmp.ne.s32.totalorder %s15_s7, %s74_s15  ;;  %p80_p5 = scmp.lt.s32.totalorder %s74_s15, %s74_s15 }
   0xb   :  { %p81_p6 = por %p80_p5, %p79_p4 }
   0xd   :  { %p82_p7 = pnand %p81_p6, %p75_p3 }
   0xf   :  { %85 = shalt.err (!%p82_p7)
}
  0x10   :  { %17 = dma.hbm_to_vmem [thread:$0]  %s148_s0, 256, %s15_s7, [#allocation3]  }
  0x11   :  { %108 = dma.done.wait [#allocation3], 256  }
  0x12   :  { %109 = vsyncadd [#allocation3], 4294967040  ;;  %v21_v0 = vld [vmem:[#allocation2] sm:$0xff]  ;;  %v22_v1 = vld [vmem:[#allocation2 + $0x8] sm:$0xff]  ;;  %s113_s0 = smov [#allocation5]  }
  0x13   :  { %v23_v2 = vmul.f32 0.044715, %v21_v0  ;;  %v24_v3 = vmul.f32 0.044715, %v22_v1  ;;  %v33_v12 = vmul.f32 0.5, %v21_v0  ;;  %v34_v14 = vmul.f32 0.5, %v22_v1 }
  0x14   :  { %s49_s18 = sshll.u32 %s113_s0, 4  ;;  %s50_s18 = int_to_ptr.vmem [resolvable:$true] %s49_s18 }
  0x15   :  { %v25_v4 = vmul.f32 %v23_v2, %v21_v0  ;;  %v26_v5 = vmul.f32 %v24_v3, %v22_v1  ;;  %s86_s19 = scalar_lea.vmem %s50_s18, 256  ;;  %p91_p9 = scmp.lt.s32.totalorder %s50_s18, %s50_s18 }
  0x16   :  { %p87_p8 = scmp.ne.s32.totalorder %s50_s18, %s86_s19  ;;  %p92_p10 = scmp.lt.s32.totalorder %s86_s19, %s86_s19 }
  0x17   :  { %v27_v6 = vmul.f32 %v25_v4, %v21_v0  ;;  %v28_v7 = vmul.f32 %v26_v5, %v22_v1 }
  0x18   :  { %p93_p11 = por %p92_p10, %p91_p9 }
  0x19   :  { %v29_v8 = vadd.f32 %v27_v6, %v21_v0  ;;  %v30_v9 = vadd.f32 %v28_v7, %v22_v1 }
  0x1a   :  { %p94_p12 = pnand %p93_p11, %p87_p8 }
  0x1b   :  { %v31_v10 = vmul.f32 0.7978846, %v29_v8  ;;  %v32_v11 = vmul.f32 0.7978846, %v30_v9 }
  0x1d   :  { %60 = vtanh.f32 %v31_v10 }
  0x1e   :  { %62 = vtanh.f32 %v32_v11 }
  0x27   :  { %v61_v13 = vpop.eup %60 }
  0x28   :  { %v63_v15 = vpop.eup %62  ;;  %v37_v16 = vadd.f32 1.0, %v61_v13 }
  0x29   :  { %v38_v17 = vadd.f32 1.0, %v63_v15 }
  0x2a   :  { %v39_v18 = vmul.f32 %v37_v16, %v33_v12 }
  0x2b   :  { %v40_v19 = vmul.f32 %v38_v17, %v34_v14 }
  0x2c   :  { %41 = vst [vmem:[#allocation5] sm:$0xff] %v39_v18 }
  0x2d   :  { %42 = vst [vmem:[#allocation5 + $0x8] sm:$0xff] %v40_v19 }
  0x2e   :  { %97 = shalt.err (!%p94_p12)
}
  0x2f   :  { %s98_s22 = scalar_lea.hbm %s149_s1, 256 }
  0x30   :  { %p99_p13 = scmp.ne.s32.totalorder %s149_s1, %s98_s22  ;;  %p102_p0 = scmp.lt.u32.totalorder %s98_s22, %s149_s1 }
  0x32   :  { %p104_p1 = pnand %p102_p0, %p99_p13 }
  0x34   :  { %107 = shalt.err (!%p104_p1)
}
  0x35   :  { %52 = dma.vmem_to_hbm [thread:$0]  %s50_s18, 256, %s149_s1, [#allocation4]  }
  0x36   :  { %110 = dma.done.wait [#allocation4], 256  }
  0x37   :  { %111 = vsyncadd [#allocation4], 4294967040 }
  0x38   :  { %56 = vsyncpa [#allocation3], 1 }
  0x39   :  { %57 = vsyncpa [#allocation4], 1 }

</bundles_post_ra>
